<compile_context>
chip_gen: v6e
topology: v6e:2x2x1
jax: 0.10.0
libtpu: 0.0.40
codegen_flags: <defaults>
</compile_context>

<pallas_src>
import functools

import jax
import jax.numpy as jnp
from jax import lax
from jax.experimental import pallas as pl
from jax.experimental.pallas import tpu as pltpu


def _flash_attention_kernel(q_ref, k_ref, v_ref, o_ref,
                            m_ref, l_ref, acc_ref,
                            *, inv_temp, approx_recip):
    """One (batch-block, q-tile, k-tile) step of online-softmax attention.

    Block shapes:
      q_ref   (bb, tq, Dkp)      k_ref (bb, tk, Dkp)      v_ref (bb, tk, Dvp)
      o_ref   (bb, tq, Dvp)
      m_ref/l_ref (bb, tq, 1)    acc_ref (bb, tq, Dvp)    (f32 scratch)
    """
    kv = pl.program_id(2)

    @pl.when(kv == 0)
    def _init():
        m_ref[...] = jnp.full_like(m_ref, -jnp.inf)
        l_ref[...] = jnp.zeros_like(l_ref)
        acc_ref[...] = jnp.zeros_like(acc_ref)

    # Fold 1/temperature into Q: touches Lq*Dk elements instead of Lq*Lk scores.
    q = q_ref[...] * inv_temp
    k = k_ref[...]
    v = v_ref[...]

    # scores (bb, tq, tk): contract on the feature dim of both operands,
    # batch over the leading block-batch dim -- no explicit K transpose.
    s = lax.dot_general(q, k, (((2,), (2,)), ((0,), (0,))),
                        preferred_element_type=jnp.float32)

    # Online (running) softmax update.
    m_prev = m_ref[...]
    m_new = jnp.maximum(m_prev, jnp.max(s, axis=-1, keepdims=True))
    alpha = jnp.exp(m_prev - m_new)          # rescale of previous partials
    p = jnp.exp(s - m_new)                   # (bb, tq, tk) f32

    l_ref[...] = alpha * l_ref[...] + jnp.sum(p, axis=-1, keepdims=True)
    acc_ref[...] = alpha * acc_ref[...] + lax.dot_general(
        p.astype(v.dtype), v, (((2,), (1,)), ((0,), (0,))),
        preferred_element_type=jnp.float32)
    m_ref[...] = m_new

    @pl.when(kv == pl.num_programs(2) - 1)
    def _finalize():
        # approx=True -> EUP vrcp (free slot); gated off for strict f32 parity.
        inv_l = pl.reciprocal(l_ref[...], approx=approx_recip)
        o_ref[...] = (acc_ref[...] * inv_l).astype(o_ref.dtype)


def _seq_tile(length, target):
    """Largest tile <= target that divides `length` and keeps the sublane
    constraint (multiple of 8) -- or the full length if none exists."""
    if length <= target:
        return length
    for t in range(min(length, target), 7, -1):
        if length % t == 0 and t % 8 == 0:
            return t
    return length


def _pad_last_to_lanes(x, lanes=128):
    pad = (-x.shape[-1]) % lanes
    if pad:
        x = jnp.pad(x, ((0, 0), (0, 0), (0, pad)))
    return x


def scaled_dot_product_attention(q, k, v, d_key, *,
                                 tq_target=256, tk_target=512):
    """q: [B, Lq, Dk], k: [B, Lk, Dk], v: [B, Lk, Dv] -> [B, Lq, Dv]."""
    B, Lq, Dk = q.shape
    Bk, Lk, Dk2 = k.shape
    Dv = v.shape[-1]
    assert B == Bk and Dk == Dk2 and v.shape[:2] == (B, Lk)

    out_dtype = q.dtype
    inv_temp = 1.0 / (float(d_key) ** 0.5)

    # Lane-dense feature dims: zero padding of Q/K adds zero contributions to
    # the scores; zero padding of V adds zero output columns we slice off.
    qp = _pad_last_to_lanes(q)
    kp = _pad_last_to_lanes(k)
    vp = _pad_last_to_lanes(v)
    Dkp = qp.shape[-1]
    Dvp = vp.shape[-1]

    # Sequence tiles (v7x-safe defaults: 256 x 512); collapse to full extent
    # for short sequences so the (8,128) block constraint is always met.
    tq = _seq_tile(Lq, tq_target)
    tk = _seq_tile(Lk, tk_target)

    # For tiny sequences, fold the whole batch into one block so a single
    # grid step amortizes the ~0.35us per-step overhead and fills sublanes.
    bb = B if (Lq <= 128 and Lk <= 128 and B <= 64) else 1

    grid = (B // bb, Lq // tq, Lk // tk)

    kernel = functools.partial(
        _flash_attention_kernel,
        inv_temp=inv_temp,
        # Exact reciprocal for f32 outputs (reference parity); EUP approx
        # reciprocal when the output is already low precision.
        approx_recip=(out_dtype != jnp.float32),
    )

    # TODO(synk): on v6e, pipeline_mode=pl.Buffered(3) on the K/V specs (and
    # larger tk) can further hide HBM latency; default 2-deep buffering keeps
    # the same config within v7x's 64 MiB VMEM.
    out = pl.pallas_call(
        kernel,
        out_shape=jax.ShapeDtypeStruct((B, Lq, Dvp), out_dtype),
        grid_spec=pltpu.PrefetchScalarGridSpec(
            num_scalar_prefetch=0,
            grid=grid,
            in_specs=[
                pl.BlockSpec((bb, tq, Dkp), lambda b, i, j: (b, i, 0)),
                pl.BlockSpec((bb, tk, Dkp), lambda b, i, j: (b, j, 0)),
                pl.BlockSpec((bb, tk, Dvp), lambda b, i, j: (b, j, 0)),
            ],
            out_specs=pl.BlockSpec((bb, tq, Dvp), lambda b, i, j: (b, i, 0)),
            scratch_shapes=[
                pltpu.VMEM((bb, tq, 1), jnp.float32),    # running max m
                pltpu.VMEM((bb, tq, 1), jnp.float32),    # running sum l
                pltpu.VMEM((bb, tq, Dvp), jnp.float32),  # output accumulator
            ],
        ),
        compiler_params=pltpu.CompilerParams(
            dimension_semantics=("parallel", "parallel", "arbitrary")),
    )(qp, kp, vp)

    if Dvp != Dv:
        out = out[..., :Dv]
    return out


class AttentionPallas:
    """JAX/Pallas equivalent of the PyTorch `Attention` module."""

    def __init__(self, d_input, d_key, d_value, n_head=10, dropout=0.1,
                 key=jax.random.PRNGKey(0)):
        self.d_input = d_input
        self.d_key = d_key
        self.d_value = d_value
        self.n_head = n_head
        self.dropout = dropout
        # q_layer / k_layer weights exist in the PyTorch module but are never
        # used in forward(); initialized deterministically for completeness.
        kq, kk = jax.random.split(key)
        bound = 1.0 / (d_input ** 0.5)
        self.q_weight = jax.random.uniform(
            kq, (d_key * n_head, d_input), jnp.float32, -bound, bound)
        self.k_weight = jax.random.uniform(
            kk, (d_key * n_head, d_input), jnp.float32, -bound, bound)

    def __call__(self, query, key, value):
        # preforward / postforward are identity; dropout is eval-mode identity.
        return scaled_dot_product_attention(query, key, value, self.d_key)


def _reference(q, k, v, d_key):
    temperature = float(d_key) ** 0.5
    scores = jnp.einsum("bqd,bkd->bqk", q, k) / temperature
    p = jax.nn.softmax(scores, axis=-1)
    return jnp.einsum("bqk,bkd->bqd", p, v)


if __name__ == "__main__":
    B, Lq, Lk = 2, 8, 8
    d_input, d_key, d_value = 32, 32, 32

    root = jax.random.PRNGKey(0)
    kq, kk, kv, kparams = jax.random.split(root, 4)
    q = jax.random.normal(kq, (B, Lq, d_key), jnp.float32)
    k = jax.random.normal(kk, (B, Lk, d_key), jnp.float32)
    v = jax.random.normal(kv, (B, Lk, d_value), jnp.float32)

    module = AttentionPallas(d_input, d_key, d_value, n_head=10, dropout=0.1,
                             key=kparams)

    out = module(q, k, v)
    out = jax.block_until_ready(out)

    ref = _reference(q, k, v, d_key)
    assert out.shape == (B, Lq, d_value)
    assert jnp.allclose(out, ref, atol=1e-4, rtol=1e-4)

    print("KERNEL_OK")
</pallas_src>

<mosaic_0001>
module attributes {stable_mosaic.version = 11 : i64} {
  func.func @_flash_attention_kernel(%arg0: i32, %arg1: i32, %arg2: i32, %arg3: memref<2x8x128xf32, #tpu.memory_space<vmem>>, %arg4: memref<2x8x128xf32, #tpu.memory_space<vmem>>, %arg5: memref<2x8x128xf32, #tpu.memory_space<vmem>>, %arg6: memref<2x8x128xf32, #tpu.memory_space<vmem>>, %arg7: memref<2x8x1xf32, #tpu.memory_space<vmem>>, %arg8: memref<2x8x1xf32, #tpu.memory_space<vmem>>, %arg9: memref<2x8x128xf32, #tpu.memory_space<vmem>>) attributes {dimension_semantics = [#tpu.dimension_semantics<parallel>, #tpu.dimension_semantics<parallel>, #tpu.dimension_semantics<arbitrary>], iteration_bounds = array<i64: 1, 1, 1>, scalar_prefetch = 0 : i64, scratch_operands = 3 : i64, tpu.core_type = #tpu.core_type<tc>, window_params = [{transform_indices = @transform_0, window_bounds = array<i64: 2, 8, 128>}, {transform_indices = @transform_1, window_bounds = array<i64: 2, 8, 128>}, {transform_indices = @transform_2, window_bounds = array<i64: 2, 8, 128>}, {transform_indices = @transform_3, window_bounds = array<i64: 2, 8, 128>}]} {
    %c0_i32 = arith.constant 0 : i32
    %0 = arith.cmpi eq, %arg2, %c0_i32 : i32
    %1 = arith.extui %0 : i1 to i32
    %c0_i32_0 = arith.constant 0 : i32
    %2 = arith.cmpi ne, %1, %c0_i32_0 : i32
    scf.if %2 {
      %cst_33 = arith.constant 0xFF800000 : f32
      %34 = vector.broadcast %cst_33 : f32 to vector<2x8x1xf32>
      %c0_34 = arith.constant 0 : index
      %c0_35 = arith.constant 0 : index
      %c0_36 = arith.constant 0 : index
      %35 = vector.load %arg7[%c0_34, %c0_35, %c0_36] : memref<2x8x1xf32, #tpu.memory_space<vmem>>, vector<2x8x1xf32>
      tpu.vector_store %arg7[%c0_34, %c0_35, %c0_36], %34 {strides = array<i32>} : memref<2x8x1xf32, #tpu.memory_space<vmem>>, vector<2x8x1xf32>,
      %cst_37 = arith.constant 0.000000e+00 : f32
      %36 = vector.broadcast %cst_37 : f32 to vector<2x8x1xf32>
      %c0_38 = arith.constant 0 : index
      %c0_39 = arith.constant 0 : index
      %c0_40 = arith.constant 0 : index
      %37 = vector.load %arg8[%c0_38, %c0_39, %c0_40] : memref<2x8x1xf32, #tpu.memory_space<vmem>>, vector<2x8x1xf32>
      tpu.vector_store %arg8[%c0_38, %c0_39, %c0_40], %36 {strides = array<i32>} : memref<2x8x1xf32, #tpu.memory_space<vmem>>, vector<2x8x1xf32>,
      %cst_41 = arith.constant 0.000000e+00 : f32
      %38 = vector.broadcast %cst_41 : f32 to vector<2x8x128xf32>
      %c0_42 = arith.constant 0 : index
      %c0_43 = arith.constant 0 : index
      %c0_44 = arith.constant 0 : index
      %39 = vector.load %arg9[%c0_42, %c0_43, %c0_44] : memref<2x8x128xf32, #tpu.memory_space<vmem>>, vector<2x8x128xf32>
      tpu.vector_store %arg9[%c0_42, %c0_43, %c0_44], %38 {strides = array<i32>} : memref<2x8x128xf32, #tpu.memory_space<vmem>>, vector<2x8x128xf32>,
    } else {
    }
    %c0 = arith.constant 0 : index
    %c0_1 = arith.constant 0 : index
    %c0_2 = arith.constant 0 : index
    %3 = vector.load %arg3[%c0, %c0_1, %c0_2] : memref<2x8x128xf32, #tpu.memory_space<vmem>>, vector<2x8x128xf32>
    %cst = arith.constant 0.176776692 : f32
    %4 = vector.broadcast %cst : f32 to vector<2x8x128xf32>
    %5 = arith.mulf %3, %4 : vector<2x8x128xf32>
    %c0_3 = arith.constant 0 : index
    %c0_4 = arith.constant 0 : index
    %c0_5 = arith.constant 0 : index
    %6 = vector.load %arg4[%c0_3, %c0_4, %c0_5] : memref<2x8x128xf32, #tpu.memory_space<vmem>>, vector<2x8x128xf32>
    %c0_6 = arith.constant 0 : index
    %c0_7 = arith.constant 0 : index
    %c0_8 = arith.constant 0 : index
    %7 = vector.load %arg5[%c0_6, %c0_7, %c0_8] : memref<2x8x128xf32, #tpu.memory_space<vmem>>, vector<2x8x128xf32>
    %cst_9 = arith.constant dense<0.000000e+00> : vector<2x8x8xf32>
    %8 = tpu.matmul %5, %6, %cst_9 {dimension_numbers = #tpu.dot_dimension_numbers<[2], [2], [1], [1], [0, 0, 0, 1, 1, 1], [0], [0]>} : vector<2x8x128xf32>, vector<2x8x128xf32>, vector<2x8x8xf32> -> vector<2x8x8xf32>
    %c0_10 = arith.constant 0 : index
    %c0_11 = arith.constant 0 : index
    %c0_12 = arith.constant 0 : index
    %9 = vector.load %arg7[%c0_10, %c0_11, %c0_12] : memref<2x8x1xf32, #tpu.memory_space<vmem>>, vector<2x8x1xf32>
    %cst_13 = arith.constant dense<0xFF800000> : vector<2x8xf32>
    %10 = vector.multi_reduction <maximumf>, %8, %cst_13 [2] : vector<2x8x8xf32> to vector<2x8xf32>
    %11 = vector.shape_cast %10 : vector<2x8xf32> to vector<2x8x1xf32>
    %12 = arith.maximumf %9, %11 : vector<2x8x1xf32>
    %13 = arith.subf %9, %12 : vector<2x8x1xf32>
    %14 = math.exp %13 : vector<2x8x1xf32>
    %15 = vector.broadcast %12 : vector<2x8x1xf32> to vector<2x8x8xf32>
    %16 = arith.subf %8, %15 : vector<2x8x8xf32>
    %17 = math.exp %16 : vector<2x8x8xf32>
    %c0_14 = arith.constant 0 : index
    %c0_15 = arith.constant 0 : index
    %c0_16 = arith.constant 0 : index
    %18 = vector.load %arg8[%c0_14, %c0_15, %c0_16] : memref<2x8x1xf32, #tpu.memory_space<vmem>>, vector<2x8x1xf32>
    %19 = arith.mulf %14, %18 : vector<2x8x1xf32>
    %cst_17 = arith.constant dense<0.000000e+00> : vector<2x8xf32>
    %20 = vector.multi_reduction <add>, %17, %cst_17 [2] : vector<2x8x8xf32> to vector<2x8xf32>
    %21 = vector.shape_cast %20 : vector<2x8xf32> to vector<2x8x1xf32>
    %22 = arith.addf %19, %21 : vector<2x8x1xf32>
    %c0_18 = arith.constant 0 : index
    %c0_19 = arith.constant 0 : index
    %c0_20 = arith.constant 0 : index
    %23 = vector.load %arg8[%c0_18, %c0_19, %c0_20] : memref<2x8x1xf32, #tpu.memory_space<vmem>>, vector<2x8x1xf32>
    tpu.vector_store %arg8[%c0_18, %c0_19, %c0_20], %22 {strides = array<i32>} : memref<2x8x1xf32, #tpu.memory_space<vmem>>, vector<2x8x1xf32>,
    %c0_21 = arith.constant 0 : index
    %c0_22 = arith.constant 0 : index
    %c0_23 = arith.constant 0 : index
    %24 = vector.load %arg9[%c0_21, %c0_22, %c0_23] : memref<2x8x128xf32, #tpu.memory_space<vmem>>, vector<2x8x128xf32>
    %25 = vector.broadcast %14 : vector<2x8x1xf32> to vector<2x8x128xf32>
    %26 = arith.mulf %25, %24 : vector<2x8x128xf32>
    %cst_24 = arith.constant dense<0.000000e+00> : vector<2x8x128xf32>
    %27 = tpu.matmul %17, %7, %cst_24 {dimension_numbers = #tpu.dot_dimension_numbers<[2], [1], [1], [2], [0, 0, 0, 1, 1, 2], [0], [0]>} : vector<2x8x8xf32>, vector<2x8x128xf32>, vector<2x8x128xf32> -> vector<2x8x128xf32>
    %28 = arith.addf %26, %27 : vector<2x8x128xf32>
    %c0_25 = arith.constant 0 : index
    %c0_26 = arith.constant 0 : index
    %c0_27 = arith.constant 0 : index
    %29 = vector.load %arg9[%c0_25, %c0_26, %c0_27] : memref<2x8x128xf32, #tpu.memory_space<vmem>>, vector<2x8x128xf32>
    tpu.vector_store %arg9[%c0_25, %c0_26, %c0_27], %28 {strides = array<i32>} : memref<2x8x128xf32, #tpu.memory_space<vmem>>, vector<2x8x128xf32>,
    %c0_28 = arith.constant 0 : index
    %c0_29 = arith.constant 0 : index
    %c0_30 = arith.constant 0 : index
    %30 = vector.load %arg7[%c0_28, %c0_29, %c0_30] : memref<2x8x1xf32, #tpu.memory_space<vmem>>, vector<2x8x1xf32>
    tpu.vector_store %arg7[%c0_28, %c0_29, %c0_30], %12 {strides = array<i32>} : memref<2x8x1xf32, #tpu.memory_space<vmem>>, vector<2x8x1xf32>,
    %c0_i32_31 = arith.constant 0 : i32
    %31 = arith.cmpi eq, %arg2, %c0_i32_31 : i32
    %32 = arith.extui %31 : i1 to i32
    %c0_i32_32 = arith.constant 0 : i32
    %33 = arith.cmpi ne, %32, %c0_i32_32 : i32
    scf.if %33 {
      %c0_33 = arith.constant 0 : index
      %c0_34 = arith.constant 0 : index
      %c0_35 = arith.constant 0 : index
      %34 = vector.load %arg8[%c0_33, %c0_34, %c0_35] : memref<2x8x1xf32, #tpu.memory_space<vmem>>, vector<2x8x1xf32>
      %35 = tpu.reciprocal %34 : vector<2x8x1xf32> -> vector<2x8x1xf32>
      %c0_36 = arith.constant 0 : index
      %c0_37 = arith.constant 0 : index
      %c0_38 = arith.constant 0 : index
      %36 = vector.load %arg9[%c0_36, %c0_37, %c0_38] : memref<2x8x128xf32, #tpu.memory_space<vmem>>, vector<2x8x128xf32>
      %37 = vector.broadcast %35 : vector<2x8x1xf32> to vector<2x8x128xf32>
      %38 = arith.mulf %36, %37 : vector<2x8x128xf32>
      %c0_39 = arith.constant 0 : index
      %c0_40 = arith.constant 0 : index
      %c0_41 = arith.constant 0 : index
      %39 = vector.load %arg6[%c0_39, %c0_40, %c0_41] : memref<2x8x128xf32, #tpu.memory_space<vmem>>, vector<2x8x128xf32>
      tpu.vector_store %arg6[%c0_39, %c0_40, %c0_41], %38 {strides = array<i32>} : memref<2x8x128xf32, #tpu.memory_space<vmem>>, vector<2x8x128xf32>,
    } else {
    }
    return
  }
  func.func @transform_0(%arg0: i32, %arg1: i32, %arg2: i32) -> (i32, i32, i32) {
    %c0_i32 = arith.constant 0 : i32
    %c0_i32_0 = arith.constant 0 : i32
    return %arg0, %arg1, %c0_i32 : i32, i32, i32
  }
  func.func @transform_1(%arg0: i32, %arg1: i32, %arg2: i32) -> (i32, i32, i32) {
    %c0_i32 = arith.constant 0 : i32
    %c0_i32_0 = arith.constant 0 : i32
    return %arg0, %arg2, %c0_i32 : i32, i32, i32
  }
  func.func @transform_2(%arg0: i32, %arg1: i32, %arg2: i32) -> (i32, i32, i32) {
    %c0_i32 = arith.constant 0 : i32
    %c0_i32_0 = arith.constant 0 : i32
    return %arg0, %arg2, %c0_i32 : i32, i32, i32
  }
  func.func @transform_3(%arg0: i32, %arg1: i32, %arg2: i32) -> (i32, i32, i32) {
    %c0_i32 = arith.constant 0 : i32
    %c0_i32_0 = arith.constant 0 : i32
    return %arg0, %arg1, %c0_i32 : i32, i32, i32
  }
}

</mosaic_0001>

<bundles_post_ra>
// kernel: tpu_custom_call.1
= control target key start
LH: loop header
LB: loop body
LE: loop exit
PB: predicated region body
PF: predicated region fallthrough
CT: control target
= control target key end

     0   :  { %8 = vsyncpa [#allocation6], 0  ;;  %s682_s0 = inlined_call_operand.hbm [shape: f32[2,8,128], index: 0, kind: input, shape index: {}]   ;;  %s683_s1 = inlined_call_operand.hbm [shape: f32[2,8,128], index: 1, kind: input, shape index: {}]   ;;  %s684_s2 = inlined_call_operand.hbm [shape: f32[2,8,128], index: 2, kind: input, shape index: {}]   ;;  %s685_s3 = inlined_call_operand.hbm [shape: f32[2,8,128], index: 3, kind: output, shape index: {}]  }
   0x1   :  { %9 = vsyncpa [#allocation9], 0 }
   0x2   :  { %10 = vsyncpa [#allocation7], 0  ;;  %s610_s12 = smov [#allocation8]   ;;  %s611_s14 = smov [#allocation5]  }
   0x3   :  { %s28_s13 = sshll.u32 %s610_s12, 4  ;;  %s16_s15 = sshll.u32 %s611_s14, 4  ;;  %s29_s13 = int_to_ptr.vmem [resolvable:$true] %s28_s13  ;;  %s17_s15 = int_to_ptr.vmem [resolvable:$true] %s16_s15 }
   0x4   :  { %s532_s16 = scalar_lea.vmem %s29_s13, 256  ;;  %p537_p1 = scmp.lt.s32.totalorder %s29_s13, %s29_s13 }
   0x5   :  { %p533_p0 = scmp.ne.s32.totalorder %s29_s13, %s532_s16  ;;  %p538_p2 = scmp.lt.s32.totalorder %s532_s16, %s532_s16 }
   0x7   :  { %p539_p3 = por %p538_p2, %p537_p1 }
   0x9   :  { %p540_p4 = pnand %p539_p3, %p533_p0 }
   0xb   :  { %543 = shalt.err (!%p540_p4)
}
   0xc   :  { %s612_s17 = smov 128   ;;  %s613_s18 = smov 8  }
   0xd   :  { %34 = dma.hbm_to_vmem [thread:$0]  %s683_s1, 256, %s29_s13, [#allocation9], %s612_s17, %s612_s17, %s613_s18  }
   0xe   :  { %s552_s21 = scalar_lea.vmem %s17_s15, 256  ;;  %p557_p6 = scmp.lt.s32.totalorder %s17_s15, %s17_s15 }
   0xf   :  { %p553_p5 = scmp.ne.s32.totalorder %s17_s15, %s552_s21  ;;  %p558_p7 = scmp.lt.s32.totalorder %s552_s21, %s552_s21 }
  0x11   :  { %p559_p8 = por %p558_p7, %p557_p6 }
  0x13   :  { %p560_p9 = pnand %p559_p8, %p553_p5 }
  0x15   :  { %563 = shalt.err (!%p560_p9)
}
  0x16   :  { %22 = dma.hbm_to_vmem [thread:$0]  %s682_s0, 256, %s17_s15, [#allocation6], %s612_s17, %s612_s17, %s613_s18  }
  0x17   :  { %s614_s24 = smov [#allocation10]  }
  0x18   :  { %s40_s25 = sshll.u32 %s614_s24, 4  ;;  %s41_s25 = int_to_ptr.vmem [resolvable:$true] %s40_s25 }
  0x19   :  { %s572_s26 = scalar_lea.vmem %s41_s25, 256  ;;  %p577_p11 = scmp.lt.s32.totalorder %s41_s25, %s41_s25 }
  0x1a   :  { %p573_p10 = scmp.ne.s32.totalorder %s41_s25, %s572_s26  ;;  %p578_p12 = scmp.lt.s32.totalorder %s572_s26, %s572_s26 }
  0x1c   :  { %p579_p13 = por %p578_p12, %p577_p11 }
  0x1e   :  { %p580_p0 = pnand %p579_p13, %p573_p10 }
  0x20   :  { %583 = shalt.err (!%p580_p0)
}
  0x21   :  { %46 = dma.hbm_to_vmem [thread:$0]  %s684_s2, 256, %s41_s25, [#allocation9], %s612_s17, %s612_s17, %s613_s18  }
  0x22   :  { %604 = dma.done.wait [#allocation6], 256  }
  0x23   :  { %605 = vsyncadd [#allocation6], 4294967040 }
  0x24   :  { %606 = dma.done.wait [#allocation9], 512  }
  0x25   :  { %607 = vsyncadd [#allocation9], 4294966784  ;;  %v615_v0 = vmov 0.0   ;;  %vm616_vm0 = vmmov 0   ;;  %v71_v1 = vld [vmem:[#allocation8] sm:$0xff]  ;;  %v72_v2 = vld [vmem:[#allocation8 + $0x8] sm:$0xff] }
  0x26   :  { %480 = vmatprep.subr.mxu0 %v615_v0  ;;  %485 = vmatprep.subr.mxu1 %v615_v0  ;;  %v67_v3 = vld [vmem:[#allocation5] sm:$0xff]  ;;  %v68_v5 = vld [vmem:[#allocation5 + $0x8] sm:$0xff]  ;;  %vm60_vm1 = vcmask 7168   ;;  %v617_v7 = vmov -inf   ;;  %vm217_vm2 = vcmask 64512   ;;  %v618_v14 = vmov 0  }
  0x27   :  { %482 = vmatprep.mubr.msk.f32.mxu0 %vm616_vm0, %v615_v0  ;;  %487 = vmatprep.mubr.msk.f32.mxu1 %vm616_vm0, %v615_v0  ;;  %v69_v4 = vmul.f32 0.17677669, %v67_v3  ;;  %v70_v6 = vmul.f32 0.17677669, %v68_v5  ;;  %61 = vst.msk [vmem:[#allocation2] sm:$0xff] %vm60_vm1, %v617_v7  ;;  %62 = vst.msk [vmem:[#allocation2 + $0x8] sm:$0xff] %vm60_vm1, %v617_v7 }
  0x28   :  { %481 = vmatpush3.xpose.msra.mxu0 %v71_v1  ;;  %486 = vmatpush3.xpose.msra.mxu1 %v72_v2  ;;  %63 = vst.msk [vmem:[#allocation3] sm:$0xff] %vm60_vm1, %v615_v0  ;;  %64 = vst.msk [vmem:[#allocation3 + $0x8] sm:$0xff] %vm60_vm1, %v615_v0  ;;  %v73_v23 = vld [vmem:[#allocation10] sm:$0xff]  ;;  %v74_v24 = vld [vmem:[#allocation10 + $0x8] sm:$0xff]  ;;  %s619_s0 = smov [#allocation11]  }
  0x29   :  { %490 = vmatprep.subr.mxu0 %v615_v0  ;;  %495 = vmatprep.subr.mxu1 %v615_v0  ;;  %s457_s2 = sshll.u32 %s619_s0, 4  ;;  %s458_s2 = int_to_ptr.vmem [resolvable:$true] %s457_s2 }
  0x2a   :  { %510 = vset.pattern.permute.xlu1 %v618_v14  ;;  %511 = vset.pattern.permute.xlu0 %v618_v14  ;;  %s584_s28 = scalar_lea.vmem %s458_s2, 256  ;;  %p589_p2 = scmp.lt.s32.totalorder %s458_s2, %s458_s2 }
  0x2b   :  { %483 = vmatmul.mubr.f32.vlgmr.msra.gmra.mxu0 %v69_v4  ;;  %488 = vmatmul.mubr.f32.vlgmr.msra.gmra.mxu1 %v70_v6  ;;  %p585_p1 = scmp.ne.s32.totalorder %s458_s2, %s584_s28  ;;  %p590_p3 = scmp.lt.s32.totalorder %s584_s28, %s584_s28 }
  0x2c   :  { %492 = vmatprep.mubr.msk.f32.mxu0 %vm616_vm0, %v615_v0  ;;  %497 = vmatprep.mubr.msk.f32.mxu1 %vm616_vm0, %v615_v0 }
  0x2d   :  { %491 = vmatpush3.msra.mxu0 %v73_v23  ;;  %496 = vmatpush3.msra.mxu1 %v74_v24  ;;  %p591_p4 = por %p590_p3, %p589_p2 }
  0x2e   :  { %v215_v15 = vld [vmem:[#allocation2] sm:$0xff]  ;;  %v216_v18 = vld [vmem:[#allocation2 + $0x8] sm:$0xff] }
  0x2f   :  { %v248_v39 = vld [vmem:[#allocation3] sm:$0xff]  ;;  %v249_v42 = vld [vmem:[#allocation3 + $0x8] sm:$0xff]  ;;  %p592_p5 = pnand %p591_p4, %p585_p1 }
  0xeb   :  { %v141_v8 = vpop.f32.mrf.mxu0  ;;  %v211_v9 = vpop.f32.mrf.mxu1 }
  0xec   :  { %v218_v10 = vsel %vm217_vm2, %v141_v8, -inf  ;;  %v221_v13 = vsel %vm217_vm2, %v211_v9, -inf }
  0xed   :  { %219 = vmax.xlane.f32.xlu0 %v218_v10  ;;  %v484_v11 = vpop.f32.mrf.mxu0  ;;  %v489_v12 = vpop.f32.mrf.mxu1 }
  0xf1   :  { %222 = vmax.xlane.f32.xlu0 %v221_v13 }
 0x176   :  { %v220_v16 = vpop.xlane.xlu0 %219 }
 0x177   :  { %v224_v17 = vmax.f32 %v215_v15, %v220_v16 }
 0x179   :  { %v226_v19 = vsub.f32 %v215_v15, %v224_v17  ;;  %427 = vst.msk [vmem:[#allocation2] sm:$0xff] %vm60_vm1, %v224_v17  ;;  %234 = vperm.xlu1 %510, %v224_v17  }
 0x17a   :  { %v223_v20 = vpop.xlane.xlu0 %222 }
 0x17b   :  { %v225_v21 = vmax.f32 %v216_v18, %v223_v20  ;;  %v228_v36 = vmul.f32 1.442695, %v226_v19 }
 0x17d   :  { %v227_v22 = vsub.f32 %v216_v18, %v225_v21  ;;  %428 = vst.msk [vmem:[#allocation2 + $0x8] sm:$0xff] %vm60_vm1, %v225_v21  ;;  %239 = vperm.xlu1 %510, %v225_v21  }
 0x17f   :  { %v230_v34 = vmul.f32 1.442695, %v227_v22 }
 0x1f4   :  { %v235_v25 = vpop.permute.xlu1 %234 }
 0x1f5   :  { %v242_v26 = vsub.f32 %v141_v8, %v235_v25 }
 0x1f7   :  { %v244_v27 = vmul.f32 1.442695, %v242_v26 }
 0x1f8   :  { %v240_v28 = vpop.permute.xlu1 %239 }
 0x1f9   :  { %512 = vpow2.f32 %v244_v27  ;;  %v243_v29 = vsub.f32 %v211_v9, %v240_v28 }
 0x1fb   :  { %v246_v30 = vmul.f32 1.442695, %v243_v29 }
 0x1fd   :  { %514 = vpow2.f32 %v246_v30 }
 0x1fe   :  { %516 = vpow2.f32 %v230_v34 }
 0x1ff   :  { %518 = vpow2.f32 %v228_v36 }
 0x206   :  { %v513_v31 = vpop.eup %512 }
 0x207   :  { %493 = vmatmul.mubr.msk.f32.vlgmr.msra.gmra.mxu0 %vm217_vm2, %v513_v31  ;;  %v252_v32 = vsel %vm217_vm2, %v513_v31, 0.0 }
 0x208   :  { %253 = vadd.xlane.f32.xlu0 %v252_v32 }
 0x20a   :  { %v515_v33 = vpop.eup %514 }
 0x20b   :  { %498 = vmatmul.mubr.msk.f32.vlgmr.msra.gmra.mxu1 %vm217_vm2, %v515_v33  ;;  %v255_v35 = vsel %vm217_vm2, %v515_v33, 0.0  ;;  %v517_v37 = vpop.eup %516 }
 0x20c   :  { %256 = vadd.xlane.f32.xlu1 %v255_v35  ;;  %v519_v38 = vpop.eup %518  ;;  %v251_v44 = vmul.f32 %v517_v37, %v249_v42 }
 0x20d   :  { %v250_v40 = vmul.f32 %v519_v38, %v248_v39 }
 0x21d   :  { %272 = vperm.xlu1 %510, %v517_v37  }
 0x21e   :  { %267 = vperm.xlu0 %511, %v519_v38  }
 0x291   :  { %v254_v41 = vpop.xlane.xlu0 %253 }
 0x292   :  { %v258_v43 = vadd.f32 %v254_v41, %v250_v40 }
 0x294   :  { %261 = vst.msk [vmem:[#allocation3] sm:$0xff] %vm60_vm1, %v258_v43 }
 0x295   :  { %v257_v45 = vpop.xlane.xlu1 %256 }
 0x296   :  { %v259_v46 = vadd.f32 %v257_v45, %v251_v44 }
 0x298   :  { %262 = vst.msk [vmem:[#allocation3 + $0x8] sm:$0xff] %vm60_vm1, %v259_v46 }
 0x299   :  { %v268_v55 = vpop.permute.xlu0 %267  ;;  %v273_v57 = vpop.permute.xlu1 %272 }
 0x29a   :  { %v275_v56 = vmul.f32 0.0, %v268_v55  ;;  %v276_v60 = vmul.f32 0.0, %v273_v57 }
 0x29b   :  { %v432_v47 = vld [vmem:[#allocation3] sm:$0xff] }
 0x29c   :  { %520 = vrcp.f32 %v432_v47 }
 0x29f   :  { %v433_v48 = vld [vmem:[#allocation3 + $0x8] sm:$0xff] }
 0x2a0   :  { %522 = vrcp.f32 %v433_v48 }
 0x2a9   :  { %v521_v49 = vpop.eup %520 }
 0x2aa   :  { %440 = vperm.xlu0 %511, %v521_v49  }
 0x2ad   :  { %v523_v50 = vpop.eup %522 }
 0x2ae   :  { %445 = vperm.xlu0 %511, %v523_v50  }
 0x2c7   :  { %v346_v51 = vpop.f32.mrf.mxu0 }
 0x2c8   :  { %v423_v58 = vadd.f32 %v346_v51, %v275_v56 }
 0x2c9   :  { %v494_v52 = vpop.f32.mrf.mxu0 }
 0x2cb   :  { %v419_v53 = vpop.f32.mrf.mxu1 }
 0x2cc   :  { %v424_v62 = vadd.f32 %v419_v53, %v276_v60 }
 0x2cd   :  { %v499_v54 = vpop.f32.mrf.mxu1 }
 0x325   :  { %v441_v59 = vpop.permute.xlu0 %440 }
 0x326   :  { %v448_v61 = vmul.f32 %v441_v59, %v423_v58 }
 0x328   :  { %450 = vst [vmem:[#allocation11] sm:$0xff] %v448_v61 }
 0x329   :  { %v446_v63 = vpop.permute.xlu0 %445 }
 0x32a   :  { %v449_v0 = vmul.f32 %v446_v63, %v424_v62 }
 0x32c   :  { %451 = vst [vmem:[#allocation11 + $0x8] sm:$0xff] %v449_v0 }
 0x32d   :  { %595 = shalt.err (!%p592_p5)
}
 0x32e   :  { %463 = dma.vmem_to_hbm [thread:$0]  %s458_s2, 256, %s685_s3, [#allocation7], %s612_s17, %s612_s17, %s613_s18  }
 0x32f   :  { %608 = dma.done.wait [#allocation7], 256  }
 0x330   :  { %609 = vsyncadd [#allocation7], 4294967040 }
 0x331   :  { %467 = vsyncpa [#allocation6], 1 }
 0x332   :  { %468 = vsyncpa [#allocation9], 1 }
 0x333   :  { %469 = vsyncpa [#allocation7], 1 }

</bundles_post_ra>
